<compile_context>
chip_gen: v5e
topology: v5e:2x2
jax: 0.10.0
libtpu: 0.0.40
codegen_flags: <defaults>
</compile_context>

<pallas_src>
import functools

import jax
import jax.numpy as jnp
from jax.experimental import pallas as pl
from jax.experimental.pallas import tpu as pltpu


def _round_up(x, m):
    return ((x + m - 1) // m) * m


def _vmem_capacity_bytes():
    try:
        return int(pltpu.get_tpu_info().vmem_capacity_bytes)
    except Exception:
        return 64 * 1024 * 1024  # conservative default (v7x per-TensorCore)


def _decoder_kernel(x_ref, w1_ref, b1_ref, w2_ref, b2_ref, out_ref, acc_ref,
                    *, inv_hw, n_classes, hw_total, thw):
    hw_step = pl.program_id(1)

    # Start of this batch block's HW sweep: clear the pooled-sum accumulator and
    # the (revisited) output block so it is never written back uninitialized.
    @pl.when(hw_step == 0)
    def _():
        acc_ref[...] = jnp.zeros_like(acc_ref)
        out_ref[...] = jnp.zeros_like(out_ref)

    # Partial global-average-pool over this (TB, C, THW) tile.  HW sits on the
    # lane axis, so the reduce is a cross-lane (XLU) op hidden under the DMA.
    x = x_ref[...].astype(jnp.float32)
    if hw_total % thw != 0:
        # Ragged tail tile: zero out lanes past the true HW extent.
        hw_idx = hw_step * thw + jax.lax.broadcasted_iota(jnp.int32, x.shape, 2)
        x = jnp.where(hw_idx < hw_total, x, 0.0)
    acc_ref[...] += jnp.sum(x, axis=-1)

    # MLP head + softmax: once per batch block, on the last HW step.
    @pl.when(hw_step == pl.num_programs(1) - 1)
    def _():
        pooled = acc_ref[...] * inv_hw                        # (TB, C) mean

        # Linear(C, C // 2)
        h = jnp.dot(pooled, w1_ref[...],
                    preferred_element_type=jnp.float32) + b1_ref[...]
        # Dropout(0.4): identity in eval mode.
        # LeakyReLU(negative_slope=0.01)
        h = jnp.where(h > 0, h, 0.01 * h)

        # Linear(C // 2, n_classes_padded)
        logits = jnp.dot(h, w2_ref[...],
                         preferred_element_type=jnp.float32) + b2_ref[...]

        # Padded class columns -> large finite negative => exp underflows to 0.
        col = jax.lax.broadcasted_iota(jnp.int32, logits.shape, 1)
        logits = jnp.where(col < n_classes, logits, jnp.float32(-1e30))

        # Numerically stable softmax; EXACT divide (runs once per batch block,
        # so the approx reciprocal buys nothing and costs accuracy).
        logits = logits - jnp.max(logits, axis=-1, keepdims=True)
        e = jnp.exp(logits)
        out_ref[...] = (e / jnp.sum(e, axis=-1, keepdims=True)).astype(out_ref.dtype)


def resnet_decoder(x_nchw, w1, b1, w2, b2, *, batch_tile=64, hw_tile=None):
    """ResNetDecoder forward (inference).

    x_nchw: (B, C, H, W) activations (f32 or bf16; accumulation is f32).
    w1: (C, C//2), b1: (C//2,) or (1, C//2)  -- first Linear, (in, out) layout.
    w2: (C//2, n_classes), b2: (n_classes,) or (1, n_classes).
    Returns (B, n_classes) softmax probabilities, float32.
    """
    B, C, H, W = x_nchw.shape
    hidden = w1.shape[1]
    n_classes = w2.shape[1]
    HW = H * W

    # NCHW consumed directly as (B, C, HW): a free reshape, no transpose/pad.
    x = x_nchw.reshape(B, C, HW)
    itemsize = jnp.dtype(x.dtype).itemsize

    # PyTorch-style 1-D biases accepted; kernel wants (1, n) rows.
    b1 = jnp.reshape(b1, (1, hidden))
    b2 = jnp.reshape(b2, (1, n_classes))

    # ---- tiling -----------------------------------------------------------
    vcap = _vmem_capacity_bytes()
    tile_budget = max(1 << 20, min(8 << 20, vcap // 10))  # per x tile (2x buffered)

    # Batch tile: multiple of 8 (sublane-dense output block) or the full batch;
    # >= 2 batch blocks whenever possible so the "parallel" axis can use both
    # TensorCores on v7x (no-op on v5e/v6e).
    if B <= 8:
        TB = B
    else:
        TB = min(int(batch_tile), max(8, ((B // 2) // 8) * 8))
        TB = max(8, (TB // 8) * 8)
    n_b = pl.cdiv(B, TB)

    def tile_bytes(thw):  # honest VMEM footprint incl. sublane/lane padding
        return TB * _round_up(C, 8) * _round_up(thw, 128) * itemsize

    # HW tile: full extent when it fits the budget, else a multiple of 128
    # lanes with the ragged tail masked in-kernel (no jnp.pad of the activation).
    if hw_tile is not None:
        THW = min(_round_up(int(hw_tile), 128), _round_up(HW, 128))
        if THW >= HW:
            THW = HW
    elif tile_bytes(HW) <= tile_budget or HW <= 128:
        THW = HW
    else:
        THW = max(128, ((tile_budget // (TB * _round_up(C, 8) * itemsize)) // 128) * 128)
    n_hw = pl.cdiv(HW, THW)

    NPAD = _round_up(n_classes, 128)        # lane-dense logits / output
    w2_p = jnp.pad(w2, ((0, 0), (0, NPAD - n_classes)))
    b2_p = jnp.pad(b2, ((0, 0), (0, NPAD - n_classes)))

    grid = (n_b, n_hw)                      # HW (reduction) axis last

    kernel = functools.partial(_decoder_kernel,
                               inv_hw=1.0 / float(HW),
                               n_classes=n_classes,
                               hw_total=HW,
                               thw=THW)

    # ---- VMEM budget (with sublane/lane padding) and cost hint -------------
    x_tile_b = tile_bytes(THW)
    out_tile_b = _round_up(TB, 8) * NPAD * 4
    w_res_b = (_round_up(C, 8) * _round_up(hidden, 128) * 4
               + 8 * _round_up(hidden, 128) * 4
               + _round_up(hidden, 8) * NPAD * 4
               + 8 * NPAD * 4)
    acc_b = _round_up(TB, 8) * _round_up(C, 128) * 4
    est = 2 * x_tile_b + 2 * out_tile_b + 2 * w_res_b + acc_b
    vmem_limit = int(min(max(est + (4 << 20), 16 << 20),
                         max(24 << 20, vcap - (8 << 20))))

    cost = pl.CostEstimate(
        flops=int(B * C * HW + 2 * B * C * hidden + 2 * B * hidden * NPAD + 4 * B * NPAD),
        transcendentals=int(B * NPAD),
        bytes_accessed=int(B * C * HW * itemsize
                           + (C * hidden + hidden + hidden * NPAD + NPAD) * 4
                           + B * NPAD * 4),
    )

    # NOTE: for very wide decoders (C ~ 2048) the resident w1/w2 could be stored
    # bf16 and/or given pipeline_mode=pl.Buffered(...) so constant weights are
    # not double-buffered (mostly a v7x 64 MiB-VMEM concern; irrelevant here).
    out_padded = pl.pallas_call(
        kernel,
        out_shape=jax.ShapeDtypeStruct((B, NPAD), jnp.float32),
        grid_spec=pltpu.PrefetchScalarGridSpec(
            num_scalar_prefetch=0,
            grid=grid,
            in_specs=[
                pl.BlockSpec((TB, C, THW), lambda b, h: (b, 0, h)),   # x (streamed)
                pl.BlockSpec((C, hidden), lambda b, h: (0, 0)),       # w1 (resident)
                pl.BlockSpec((1, hidden), lambda b, h: (0, 0)),       # b1 (resident)
                pl.BlockSpec((hidden, NPAD), lambda b, h: (0, 0)),    # w2 (resident)
                pl.BlockSpec((1, NPAD), lambda b, h: (0, 0)),         # b2 (resident)
            ],
            out_specs=pl.BlockSpec((TB, NPAD), lambda b, h: (b, 0)),
            scratch_shapes=[pltpu.VMEM((TB, C), jnp.float32)],        # pooled-sum acc
        ),
        compiler_params=pltpu.CompilerParams(
            dimension_semantics=("parallel", "arbitrary"),
            vmem_limit_bytes=vmem_limit,
        ),
        cost_estimate=cost,
    )(x, w1, b1, w2_p, b2_p)

    return out_padded[:, :n_classes]


def _reference(x, w1, b1, w2, b2):
    """Pure-JAX reference (eval-mode dropout = identity)."""
    B, C, H, W = x.shape
    pooled = jnp.mean(x.reshape(B, C, H * W), axis=-1)
    h = jnp.dot(pooled, w1, precision=jax.lax.Precision.HIGHEST) + b1
    h = jnp.where(h > 0, h, 0.01 * h)
    logits = jnp.dot(h, w2, precision=jax.lax.Precision.HIGHEST) + b2
    return jax.nn.softmax(logits, axis=-1)


if __name__ == "__main__":
    key = jax.random.PRNGKey(0)

    def make_case(k, B, C, H, W, n_classes):
        hidden = C // 2
        ks = jax.random.split(k, 5)
        x = jax.random.normal(ks[0], (B, C, H, W), dtype=jnp.float32)
        lim1 = 1.0 / (C ** 0.5)
        w1 = jax.random.uniform(ks[1], (C, hidden), jnp.float32, -lim1, lim1)
        b1 = jax.random.uniform(ks[2], (hidden,), jnp.float32, -lim1, lim1)
        lim2 = 1.0 / (hidden ** 0.5)
        w2 = jax.random.uniform(ks[3], (hidden, n_classes), jnp.float32, -lim2, lim2)
        b2 = jax.random.uniform(ks[4], (n_classes,), jnp.float32, -lim2, lim2)
        return x, w1, b1, w2, b2

    k1, k2 = jax.random.split(key)

    # Case A: typical decoder-style input -> one full-HW block per batch block.
    xa, w1a, b1a, w2a, b2a = make_case(k1, B=8, C=64, H=8, W=8, n_classes=10)
    out_a = jax.block_until_ready(resnet_decoder(xa, w1a, b1a, w2a, b2a))
    ref_a = _reference(xa, w1a, b1a, w2a, b2a)
    assert out_a.shape == (8, 10)
    assert bool(jnp.max(jnp.abs(jnp.sum(out_a, axis=1) - 1.0)) < 1e-4)
    assert bool(jnp.max(jnp.abs(out_a - ref_a)) < 2e-3)

    # Case B: larger spatial extent with forced HW streaming: grid = (2 batch
    # blocks x 4 HW blocks), ragged tail (900 = 3*256 + 132) exercises the
    # accumulator, the pl.when epilogue, and the in-kernel tail mask.
    xb, w1b, b1b, w2b, b2b = make_case(k2, B=16, C=16, H=30, W=30, n_classes=10)
    out_b = jax.block_until_ready(
        resnet_decoder(xb, w1b, b1b, w2b, b2b, batch_tile=8, hw_tile=256))
    ref_b = _reference(xb, w1b, b1b, w2b, b2b)
    assert out_b.shape == (16, 10)
    assert bool(jnp.max(jnp.abs(jnp.sum(out_b, axis=1) - 1.0)) < 1e-4)
    assert bool(jnp.max(jnp.abs(out_b - ref_b)) < 2e-3)

    print("KERNEL_OK")
</pallas_src>

<mosaic_0001>
module attributes {stable_mosaic.version = 11 : i64} {
  func.func @_decoder_kernel(%arg0: i32, %arg1: i32, %arg2: memref<8x64x64xf32, #tpu.memory_space<vmem>>, %arg3: memref<64x32xf32, #tpu.memory_space<vmem>>, %arg4: memref<1x32xf32, #tpu.memory_space<vmem>>, %arg5: memref<32x128xf32, #tpu.memory_space<vmem>>, %arg6: memref<1x128xf32, #tpu.memory_space<vmem>>, %arg7: memref<8x128xf32, #tpu.memory_space<vmem>>, %arg8: memref<8x64xf32, #tpu.memory_space<vmem>>) attributes {dimension_semantics = [#tpu.dimension_semantics<parallel>, #tpu.dimension_semantics<arbitrary>], iteration_bounds = array<i64: 1, 1>, scalar_prefetch = 0 : i64, scratch_operands = 1 : i64, tpu.core_type = #tpu.core_type<tc>, window_params = [{transform_indices = @transform_0, window_bounds = array<i64: 8, 64, 64>}, {pipeline_mode = #tpu.pipeline_mode<synchronous>, transform_indices = @transform_1, window_bounds = array<i64: 64, 32>}, {pipeline_mode = #tpu.pipeline_mode<synchronous>, transform_indices = @transform_2, window_bounds = array<i64: 1, 32>}, {pipeline_mode = #tpu.pipeline_mode<synchronous>, transform_indices = @transform_3, window_bounds = array<i64: 32, 128>}, {pipeline_mode = #tpu.pipeline_mode<synchronous>, transform_indices = @transform_4, window_bounds = array<i64: 1, 128>}, {transform_indices = @transform_5, window_bounds = array<i64: 8, 128>}]} {
    %c0_i32 = arith.constant 0 : i32
    %0 = arith.cmpi eq, %arg1, %c0_i32 : i32
    %1 = arith.extui %0 : i1 to i32
    %c0_i32_0 = arith.constant 0 : i32
    %2 = arith.cmpi ne, %1, %c0_i32_0 : i32
    scf.if %2 {
      %cst_9 = arith.constant 0.000000e+00 : f32
      %11 = vector.broadcast %cst_9 : f32 to vector<8x64xf32>
      %c0_10 = arith.constant 0 : index
      %c0_11 = arith.constant 0 : index
      %12 = vector.load %arg8[%c0_10, %c0_11] : memref<8x64xf32, #tpu.memory_space<vmem>>, vector<8x64xf32>
      tpu.vector_store %arg8[%c0_10, %c0_11], %11 {strides = array<i32>} : memref<8x64xf32, #tpu.memory_space<vmem>>, vector<8x64xf32>,
      %cst_12 = arith.constant 0.000000e+00 : f32
      %13 = vector.broadcast %cst_12 : f32 to vector<8x128xf32>
      %c0_13 = arith.constant 0 : index
      %c0_14 = arith.constant 0 : index
      %14 = vector.load %arg7[%c0_13, %c0_14] : memref<8x128xf32, #tpu.memory_space<vmem>>, vector<8x128xf32>
      tpu.vector_store %arg7[%c0_13, %c0_14], %13 {strides = array<i32>} : memref<8x128xf32, #tpu.memory_space<vmem>>, vector<8x128xf32>,
    } else {
    }
    %c0 = arith.constant 0 : index
    %c0_1 = arith.constant 0 : index
    %c0_2 = arith.constant 0 : index
    %3 = vector.load %arg2[%c0, %c0_1, %c0_2] : memref<8x64x64xf32, #tpu.memory_space<vmem>>, vector<8x64x64xf32>
    %c0_3 = arith.constant 0 : index
    %c0_4 = arith.constant 0 : index
    %4 = vector.load %arg8[%c0_3, %c0_4] : memref<8x64xf32, #tpu.memory_space<vmem>>, vector<8x64xf32>
    %cst = arith.constant dense<0.000000e+00> : vector<8x64xf32>
    %5 = vector.multi_reduction <add>, %3, %cst [2] : vector<8x64x64xf32> to vector<8x64xf32>
    %6 = arith.addf %4, %5 : vector<8x64xf32>
    %c0_5 = arith.constant 0 : index
    %c0_6 = arith.constant 0 : index
    %7 = vector.load %arg8[%c0_5, %c0_6] : memref<8x64xf32, #tpu.memory_space<vmem>>, vector<8x64xf32>
    tpu.vector_store %arg8[%c0_5, %c0_6], %6 {strides = array<i32>} : memref<8x64xf32, #tpu.memory_space<vmem>>, vector<8x64xf32>,
    %c0_i32_7 = arith.constant 0 : i32
    %8 = arith.cmpi eq, %arg1, %c0_i32_7 : i32
    %9 = arith.extui %8 : i1 to i32
    %c0_i32_8 = arith.constant 0 : i32
    %10 = arith.cmpi ne, %9, %c0_i32_8 : i32
    scf.if %10 {
      %c0_9 = arith.constant 0 : index
      %c0_10 = arith.constant 0 : index
      %11 = vector.load %arg8[%c0_9, %c0_10] : memref<8x64xf32, #tpu.memory_space<vmem>>, vector<8x64xf32>
      %cst_11 = arith.constant 1.562500e-02 : f32
      %12 = vector.broadcast %cst_11 : f32 to vector<8x64xf32>
      %13 = arith.mulf %11, %12 : vector<8x64xf32>
      %c0_12 = arith.constant 0 : index
      %c0_13 = arith.constant 0 : index
      %14 = vector.load %arg3[%c0_12, %c0_13] : memref<64x32xf32, #tpu.memory_space<vmem>>, vector<64x32xf32>
      %cst_14 = arith.constant dense<0.000000e+00> : vector<8x32xf32>
      %15 = tpu.matmul %13, %14, %cst_14 {dimension_numbers = #tpu.dot_dimension_numbers<[1], [0], [0], [1], [0, 0, 1, 1], [], []>} : vector<8x64xf32>, vector<64x32xf32>, vector<8x32xf32> -> vector<8x32xf32>
      %c0_15 = arith.constant 0 : index
      %c0_16 = arith.constant 0 : index
      %16 = vector.load %arg4[%c0_15, %c0_16] : memref<1x32xf32, #tpu.memory_space<vmem>>, vector<1x32xf32>
      %17 = vector.broadcast %16 : vector<1x32xf32> to vector<8x32xf32>
      %18 = arith.addf %15, %17 : vector<8x32xf32>
      %cst_17 = arith.constant 0.000000e+00 : f32
      %19 = vector.broadcast %cst_17 : f32 to vector<8x32xf32>
      %20 = arith.cmpf ogt, %18, %19 : vector<8x32xf32>
      %cst_18 = arith.constant 0.00999999977 : f32
      %21 = vector.broadcast %cst_18 : f32 to vector<8x32xf32>
      %22 = arith.mulf %21, %18 : vector<8x32xf32>
      %23 = arith.select %20, %18, %22 : vector<8x32xi1>, vector<8x32xf32>
      %c0_19 = arith.constant 0 : index
      %c0_20 = arith.constant 0 : index
      %24 = vector.load %arg5[%c0_19, %c0_20] : memref<32x128xf32, #tpu.memory_space<vmem>>, vector<32x128xf32>
      %cst_21 = arith.constant dense<0.000000e+00> : vector<8x128xf32>
      %25 = tpu.matmul %23, %24, %cst_21 {dimension_numbers = #tpu.dot_dimension_numbers<[1], [0], [0], [1], [0, 0, 1, 1], [], []>} : vector<8x32xf32>, vector<32x128xf32>, vector<8x128xf32> -> vector<8x128xf32>
      %c0_22 = arith.constant 0 : index
      %c0_23 = arith.constant 0 : index
      %26 = vector.load %arg6[%c0_22, %c0_23] : memref<1x128xf32, #tpu.memory_space<vmem>>, vector<1x128xf32>
      %27 = vector.broadcast %26 : vector<1x128xf32> to vector<8x128xf32>
      %28 = arith.addf %25, %27 : vector<8x128xf32>
      %29 = tpu.iota {dimensions = array<i32: 1>} : vector<8x128xi32>
      %c10_i32 = arith.constant 10 : i32
      %30 = vector.broadcast %c10_i32 : i32 to vector<8x128xi32>
      %31 = arith.cmpi slt, %29, %30 : vector<8x128xi32>
      %cst_24 = arith.constant -1.000000e+30 : f32
      %32 = vector.broadcast %cst_24 : f32 to vector<8x128xf32>
      %33 = arith.select %31, %28, %32 : vector<8x128xi1>, vector<8x128xf32>
      %cst_25 = arith.constant dense<0xFF800000> : vector<8xf32>
      %34 = vector.multi_reduction <maximumf>, %33, %cst_25 [1] : vector<8x128xf32> to vector<8xf32>
      %35 = vector.shape_cast %34 : vector<8xf32> to vector<8x1xf32>
      %36 = vector.broadcast %35 : vector<8x1xf32> to vector<8x128xf32>
      %37 = arith.subf %33, %36 : vector<8x128xf32>
      %38 = math.exp %37 : vector<8x128xf32>
      %cst_26 = arith.constant dense<0.000000e+00> : vector<8xf32>
      %39 = vector.multi_reduction <add>, %38, %cst_26 [1] : vector<8x128xf32> to vector<8xf32>
      %40 = vector.shape_cast %39 : vector<8xf32> to vector<8x1xf32>
      %41 = vector.broadcast %40 : vector<8x1xf32> to vector<8x128xf32>
      %42 = arith.divf %38, %41 : vector<8x128xf32>
      %c0_27 = arith.constant 0 : index
      %c0_28 = arith.constant 0 : index
      %43 = vector.load %arg7[%c0_27, %c0_28] : memref<8x128xf32, #tpu.memory_space<vmem>>, vector<8x128xf32>
      tpu.vector_store %arg7[%c0_27, %c0_28], %42 {strides = array<i32>} : memref<8x128xf32, #tpu.memory_space<vmem>>, vector<8x128xf32>,
    } else {
    }
    return
  }
  func.func @transform_0(%arg0: i32, %arg1: i32) -> (i32, i32, i32) {
    %c0_i32 = arith.constant 0 : i32
    %c0_i32_0 = arith.constant 0 : i32
    return %arg0, %c0_i32, %arg1 : i32, i32, i32
  }
  func.func @transform_1(%arg0: i32, %arg1: i32) -> (i32, i32) {
    %c0_i32 = arith.constant 0 : i32
    %c0_i32_0 = arith.constant 0 : i32
    %c0_i32_1 = arith.constant 0 : i32
    return %c0_i32, %c0_i32_0 : i32, i32
  }
  func.func @transform_2(%arg0: i32, %arg1: i32) -> (i32, i32) {
    %c0_i32 = arith.constant 0 : i32
    %c0_i32_0 = arith.constant 0 : i32
    %c0_i32_1 = arith.constant 0 : i32
    return %c0_i32, %c0_i32_0 : i32, i32
  }
  func.func @transform_3(%arg0: i32, %arg1: i32) -> (i32, i32) {
    %c0_i32 = arith.constant 0 : i32
    %c0_i32_0 = arith.constant 0 : i32
    %c0_i32_1 = arith.constant 0 : i32
    return %c0_i32, %c0_i32_0 : i32, i32
  }
  func.func @transform_4(%arg0: i32, %arg1: i32) -> (i32, i32) {
    %c0_i32 = arith.constant 0 : i32
    %c0_i32_0 = arith.constant 0 : i32
    %c0_i32_1 = arith.constant 0 : i32
    return %c0_i32, %c0_i32_0 : i32, i32
  }
  func.func @transform_5(%arg0: i32, %arg1: i32) -> (i32, i32) {
    %c0_i32 = arith.constant 0 : i32
    %c0_i32_0 = arith.constant 0 : i32
    return %arg0, %c0_i32 : i32, i32
  }
}

</mosaic_0001>

<bundles_post_ra>
// kernel: tpu_custom_call.1
= control target key start
LH: loop header
LB: loop body
LE: loop exit
PB: predicated region body
PF: predicated region fallthrough
CT: control target
= control target key end

     0   :  { %10 = vsyncpa [#allocation4], 0  ;;  %s1022_s0 = inlined_call_operand.hbm [shape: f32[8,64,64], index: 0, kind: input, shape index: {}]   ;;  %s1023_s1 = inlined_call_operand.vmem [shape: f32[64,32], index: 1, kind: input, shape index: {}]   ;;  %s1024_s2 = inlined_call_operand.vmem [shape: f32[1,32], index: 2, kind: input, shape index: {}]   ;;  %s1025_s3 = inlined_call_operand.vmem [shape: f32[32,128], index: 3, kind: input, shape index: {}]   ;;  %s1026_s4 = inlined_call_operand.vmem [shape: f32[1,128], index: 4, kind: input, shape index: {}]   ;;  %s1027_s5 = inlined_call_operand.hbm [shape: f32[8,128], index: 5, kind: output, shape index: {}]  }
   0x1   :  { %11 = vsyncpa [#allocation5], 0  ;;  %s16_s20 = sshll.u32 %s1022_s0, 4  ;;  %s701_s21 = smov [#allocation3]   ;;  %s17_s20 = int_to_ptr.hbm [resolvable:$true] %s16_s20 }
   0x2   :  { %s18_s22 = sshll.u32 %s701_s21, 4  ;;  %s702_s23 = smov 128   ;;  %s19_s22 = int_to_ptr.vmem [resolvable:$true] %s18_s22 }
   0x3   :  { %s703_s24 = smov 8  }
   0x4   :  { %24 = dma.hbm_to_vmem [thread:$0]  %s17_s20, 8192, %s19_s22, [#allocation4], %s702_s23, %s702_s23, %s703_s24  }
   0x5   :  { %697 = dma.done.wait [#allocation4], 8192  }
   0x6   :  { %698 = vsyncadd [#allocation4], 4294959104  ;;  %vm41_vm0 = vcmask 523264   ;;  %v52_v0 = vld [vmem:[#allocation3 + $0x40] sm:$0xff]  ;;  %v46_v1 = vld [vmem:[#allocation3 + $0x10] sm:$0xff]  ;;  %vm371_vm1 = vcmask 130112  }
   0x7   :  { %v44_v2 = vld [vmem:[#allocation3] sm:$0xff]  ;;  %v134_v3 = vsel %vm41_vm0, %v52_v0, 0.0  ;;  %v116_v4 = vsel %vm41_vm0, %v46_v1, 0.0  ;;  %v53_v6 = vld [vmem:[#allocation3 + $0x48] sm:$0xff]  ;;  %v54_v7 = vld [vmem:[#allocation3 + $0x50] sm:$0xff]  ;;  %vm375_vm2 = vcmask 195712  }
   0x8   :  { %v110_v5 = vsel %vm41_vm0, %v44_v2, 0.0  ;;  %135 = vadd.xlane.f32.xlu1 %v134_v3  ;;  %117 = vadd.xlane.f32.xlu2 %v116_v4  ;;  %v45_v8 = vld [vmem:[#allocation3 + $0x8] sm:$0xff]  ;;  %v137_v9 = vsel %vm41_vm0, %v53_v6, 0.0  ;;  %v140_v10 = vsel %vm41_vm0, %v54_v7, 0.0  ;;  %v47_v13 = vld [vmem:[#allocation3 + $0x18] sm:$0xff]  ;;  %v60_v14 = vld [vmem:[#allocation3 + $0x80] sm:$0xff] }
   0x9   :  { %111 = vadd.xlane.f32.xlu0 %v110_v5  ;;  %v113_v11 = vsel %vm41_vm0, %v45_v8, 0.0  ;;  %v61_v12 = vld [vmem:[#allocation3 + $0x88] sm:$0xff]  ;;  %v119_v16 = vsel %vm41_vm0, %v47_v13, 0.0  ;;  %v158_v17 = vsel %vm41_vm0, %v60_v14, 0.0  ;;  %v62_v18 = vld [vmem:[#allocation3 + $0x90] sm:$0xff]  ;;  %v68_v19 = vld [vmem:[#allocation3 + $0xc0] sm:$0xff] }
   0xa   :  { %v161_v15 = vsel %vm41_vm0, %v61_v12, 0.0  ;;  %v55_v20 = vld [vmem:[#allocation3 + $0x58] sm:$0xff]  ;;  %v164_v21 = vsel %vm41_vm0, %v62_v18, 0.0  ;;  %v182_v22 = vsel %vm41_vm0, %v68_v19, 0.0  ;;  %v48_v24 = vld [vmem:[#allocation3 + $0x20] sm:$0xff]  ;;  %v69_v26 = vld [vmem:[#allocation3 + $0xc8] sm:$0xff] }
   0xb   :  { %v143_v23 = vsel %vm41_vm0, %v55_v20, 0.0  ;;  %v56_v25 = vld [vmem:[#allocation3 + $0x60] sm:$0xff]  ;;  %v122_v27 = vsel %vm41_vm0, %v48_v24, 0.0  ;;  %v185_v29 = vsel %vm41_vm0, %v69_v26, 0.0  ;;  %v70_v30 = vld [vmem:[#allocation3 + $0xd0] sm:$0xff]  ;;  %v63_v32 = vld [vmem:[#allocation3 + $0x98] sm:$0xff]  ;;  %v366_v26 = vlaneseq }
   0xc   :  { %v146_v28 = vsel %vm41_vm0, %v56_v25, 0.0  ;;  %v76_v31 = vld [vmem:[#allocation3 + $0x100] sm:$0xff]  ;;  %v188_v33 = vsel %vm41_vm0, %v70_v30, 0.0  ;;  %v167_v35 = vsel %vm41_vm0, %v63_v32, 0.0  ;;  %v49_v36 = vld [vmem:[#allocation3 + $0x28] sm:$0xff]  ;;  %v71_v42 = vld [vmem:[#allocation3 + $0xd8] sm:$0xff] }
   0xd   :  { %v206_v34 = vsel %vm41_vm0, %v76_v31, 0.0  ;;  %v57_v37 = vld [vmem:[#allocation3 + $0x68] sm:$0xff]  ;;  %v125_v39 = vsel %vm41_vm0, %v49_v36, 0.0  ;;  %v78_v43 = vld [vmem:[#allocation3 + $0x110] sm:$0xff]  ;;  %v64_v44 = vld [vmem:[#allocation3 + $0xa0] sm:$0xff]  ;;  %v191_v45 = vsel %vm41_vm0, %v71_v42, 0.0 }
   0xe   :  { %v77_v38 = vld [vmem:[#allocation3 + $0x108] sm:$0xff]  ;;  %v149_v40 = vsel %vm41_vm0, %v57_v37, 0.0  ;;  %v212_v46 = vsel %vm41_vm0, %v78_v43, 0.0  ;;  %v170_v47 = vsel %vm41_vm0, %v64_v44, 0.0  ;;  %v50_v49 = vld [vmem:[#allocation3 + $0x30] sm:$0xff]  ;;  %v84_v50 = vld [vmem:[#allocation3 + $0x140] sm:$0xff] }
   0xf   :  { %v209_v41 = vsel %vm41_vm0, %v77_v38, 0.0  ;;  %v85_v48 = vld [vmem:[#allocation3 + $0x148] sm:$0xff]  ;;  %v128_v52 = vsel %vm41_vm0, %v50_v49, 0.0  ;;  %v230_v53 = vsel %vm41_vm0, %v84_v50, 0.0  ;;  %v72_v55 = vld [vmem:[#allocation3 + $0xe0] sm:$0xff]  ;;  %v58_v56 = vld [vmem:[#allocation3 + $0x70] sm:$0xff] }
  0x10   :  { %138 = vadd.xlane.f32.xlu1 %v137_v9  ;;  %141 = vadd.xlane.f32.xlu2 %v140_v10  ;;  %v233_v51 = vsel %vm41_vm0, %v85_v48, 0.0  ;;  %v65_v54 = vld [vmem:[#allocation3 + $0xa8] sm:$0xff]  ;;  %v194_v58 = vsel %vm41_vm0, %v72_v55, 0.0  ;;  %v152_v59 = vsel %vm41_vm0, %v58_v56, 0.0  ;;  %v86_v60 = vld [vmem:[#allocation3 + $0x150] sm:$0xff]  ;;  %v92_v61 = vld [vmem:[#allocation3 + $0x180] sm:$0xff] }
  0x11   :  { %114 = vadd.xlane.f32.xlu0 %v113_v11  ;;  %v173_v57 = vsel %vm41_vm0, %v65_v54, 0.0  ;;  %v79_v62 = vld [vmem:[#allocation3 + $0x118] sm:$0xff]  ;;  %v236_v63 = vsel %vm41_vm0, %v86_v60, 0.0  ;;  %v254_v0 = vsel %vm41_vm0, %v92_v61, 0.0  ;;  %v93_v4 = vld [vmem:[#allocation3 + $0x188] sm:$0xff]  ;;  %v80_v9 = vld [vmem:[#allocation3 + $0x120] sm:$0xff] }
  0x12   :  { %v215_v1 = vsel %vm41_vm0, %v79_v62, 0.0  ;;  %v51_v2 = vld [vmem:[#allocation3 + $0x38] sm:$0xff]  ;;  %v257_v7 = vsel %vm41_vm0, %v93_v4, 0.0  ;;  %v73_v8 = vld [vmem:[#allocation3 + $0xe8] sm:$0xff]  ;;  %v66_v10 = vld [vmem:[#allocation3 + $0xb0] sm:$0xff]  ;;  %v218_v12 = vsel %vm41_vm0, %v80_v9, 0.0 }
  0x13   :  { %v59_v3 = vld [vmem:[#allocation3 + $0x78] sm:$0xff]  ;;  %v131_v5 = vsel %vm41_vm0, %v51_v2, 0.0  ;;  %v197_v11 = vsel %vm41_vm0, %v73_v8, 0.0  ;;  %v176_v13 = vsel %vm41_vm0, %v66_v10, 0.0  ;;  %v94_v14 = vld [vmem:[#allocation3 + $0x190] sm:$0xff]  ;;  %v81_v31 = vld [vmem:[#allocation3 + $0x128] sm:$0xff] }
  0x14   :  { %v155_v6 = vsel %vm41_vm0, %v59_v3, 0.0  ;;  %v67_v20 = vld [vmem:[#allocation3 + $0xb8] sm:$0xff]  ;;  %v221_v36 = vsel %vm41_vm0, %v81_v31, 0.0  ;;  %v102_v44 = vld [vmem:[#allocation3 + $0x1d0] sm:$0xff]  ;;  %vm379_vm3 = vcmask 261312   ;;  %v97_v10 = vld [vmem:[#allocation3 + $0x1a8] sm:$0xff] }
  0x15   :  { %v284_v54 = vsel %vm41_vm0, %v102_v44, 0.0  ;;  %v103_v60 = vld [vmem:[#allocation3 + $0x1d8] sm:$0xff]  ;;  %v90_v9 = vld [vmem:[#allocation3 + $0x170] sm:$0xff]  ;;  %vm383_vm4 = vcmask 326912   ;;  %vm387_vm5 = vcmask 392512   ;;  %vm391_vm6 = vcmask 458112  }
  0x16   :  { %vm395_vm7 = vcmask 523712   ;;  %vm502_vm8 = vcmask 1041409   ;;  %vm504_vm9 = vcmask 1042434   ;;  %vm506_vm10 = vcmask 1043459   ;;  %s626_s26 = sshll.u32 %s1027_s5, 4  ;;  %s627_s26 = int_to_ptr.hbm [resolvable:$true] %s626_s26 }
  0x17   :  { %vm508_vm11 = vcmask 1044484   ;;  %vm510_vm12 = vcmask 1045509   ;;  %vm512_vm13 = vcmask 1046534   ;;  %vm514_vm14 = vcmask 1047559  }
  0x18   :  { %162 = vadd.xlane.f32.xlu1 %v161_v15  ;;  %120 = vadd.xlane.f32.xlu2 %v119_v16  ;;  %v100_v15 = vld [vmem:[#allocation3 + $0x1c0] sm:$0xff]  ;;  %v87_v16 = vld [vmem:[#allocation3 + $0x158] sm:$0xff] }
  0x19   :  { %159 = vadd.xlane.f32.xlu0 %v158_v17  ;;  %v260_v17 = vsel %vm41_vm0, %v94_v14, 0.0  ;;  %v278_v18 = vsel %vm41_vm0, %v100_v15, 0.0  ;;  %v239_v19 = vsel %vm41_vm0, %v87_v16, 0.0 }
  0x20   :  { %165 = vadd.xlane.f32.xlu1 %v164_v21  ;;  %183 = vadd.xlane.f32.xlu2 %v182_v22  ;;  %v74_v21 = vld [vmem:[#allocation3 + $0xf0] sm:$0xff]  ;;  %v101_v22 = vld [vmem:[#allocation3 + $0x1c8] sm:$0xff] }
  0x21   :  { %144 = vadd.xlane.f32.xlu0 %v143_v23  ;;  %v179_v23 = vsel %vm41_vm0, %v67_v20, 0.0  ;;  %v200_v24 = vsel %vm41_vm0, %v74_v21, 0.0  ;;  %v281_v25 = vsel %vm41_vm0, %v101_v22, 0.0 }
  0x28   :  { %123 = vadd.xlane.f32.xlu1 %v122_v27  ;;  %147 = vadd.xlane.f32.xlu2 %v146_v28  ;;  %v88_v27 = vld [vmem:[#allocation3 + $0x160] sm:$0xff]  ;;  %v95_v28 = vld [vmem:[#allocation3 + $0x198] sm:$0xff] }
  0x29   :  { %186 = vadd.xlane.f32.xlu0 %v185_v29 }
  0x30   :  { %189 = vadd.xlane.f32.xlu1 %v188_v33  ;;  %207 = vadd.xlane.f32.xlu2 %v206_v34  ;;  %v242_v33 = vsel %vm41_vm0, %v88_v27, 0.0  ;;  %v263_v34 = vsel %vm41_vm0, %v95_v28, 0.0  ;;  %v104_v28 = vld [vmem:[#allocation3 + $0x1e0] sm:$0xff] }
  0x31   :  { %168 = vadd.xlane.f32.xlu0 %v167_v35  ;;  %v786_v35 = vand.u32 127, %v366_v26 }
  0x33   :  { %v790_v37 = vadd.s32 4294967288, %v786_v35  ;;  %v827_v22 = vadd.s32 4294967264, %v786_v35 }
  0x38   :  { %126 = vadd.xlane.f32.xlu1 %v125_v39  ;;  %150 = vadd.xlane.f32.xlu2 %v149_v40  ;;  %v794_v39 = vadd.s32 4294967280, %v786_v35  ;;  %v75_v40 = vld [vmem:[#allocation3 + $0xf8] sm:$0xff] }
  0x39   :  { %210 = vadd.xlane.f32.xlu0 %v209_v41  ;;  %v82_v41 = vld [vmem:[#allocation3 + $0x130] sm:$0xff]  ;;  %v203_v50 = vsel %vm41_vm0, %v75_v40, 0.0  ;;  %v290_v40 = vsel %vm41_vm0, %v104_v28, 0.0 }
  0x40   :  { %192 = vadd.xlane.f32.xlu1 %v191_v45  ;;  %213 = vadd.xlane.f32.xlu2 %v212_v46 }
  0x41   :  { %171 = vadd.xlane.f32.xlu0 %v170_v47 }
  0x48   :  { %234 = vadd.xlane.f32.xlu1 %v233_v51  ;;  %129 = vadd.xlane.f32.xlu2 %v128_v52  ;;  %v224_v51 = vsel %vm41_vm0, %v82_v41, 0.0 }
  0x49   :  { %231 = vadd.xlane.f32.xlu0 %v230_v53 }
  0x50   :  { %174 = vadd.xlane.f32.xlu1 %v173_v57  ;;  %195 = vadd.xlane.f32.xlu2 %v194_v58  ;;  %v808_v57 = vadd.s32 4294967272, %v786_v35 }
  0x51   :  { %153 = vadd.xlane.f32.xlu0 %v152_v59  ;;  %v96_v59 = vld [vmem:[#allocation3 + $0x1a0] sm:$0xff] }
  0x52   :  { %v266_v4 = vsel %vm41_vm0, %v96_v59, 0.0 }
  0x58   :  { %237 = vadd.xlane.f32.xlu1 %v236_v63  ;;  %255 = vadd.xlane.f32.xlu2 %v254_v0  ;;  %v89_v63 = vld [vmem:[#allocation3 + $0x168] sm:$0xff] }
  0x59   :  { %216 = vadd.xlane.f32.xlu0 %v215_v1 }
  0x60   :  { %132 = vadd.xlane.f32.xlu1 %v131_v5  ;;  %156 = vadd.xlane.f32.xlu2 %v155_v6  ;;  %v287_v5 = vsel %vm41_vm0, %v103_v60, 0.0  ;;  %v107_v60 = vld [vmem:[#allocation3 + $0x1f8] sm:$0xff] }
  0x61   :  { %258 = vadd.xlane.f32.xlu0 %v257_v7  ;;  %v245_v7 = vsel %vm41_vm0, %v89_v63, 0.0 }
  0x68   :  { %198 = vadd.xlane.f32.xlu1 %v197_v11  ;;  %219 = vadd.xlane.f32.xlu2 %v218_v12 }
  0x69   :  { %177 = vadd.xlane.f32.xlu0 %v176_v13  ;;  %v83_v13 = vld [vmem:[#allocation3 + $0x138] sm:$0xff] }
  0x6a   :  { %v227_v20 = vsel %vm41_vm0, %v83_v13, 0.0 }
  0x70   :  { %261 = vadd.xlane.f32.xlu1 %v260_v17  ;;  %279 = vadd.xlane.f32.xlu2 %v278_v18  ;;  %v248_v17 = vsel %vm41_vm0, %v90_v9, 0.0  ;;  %v269_v18 = vsel %vm41_vm0, %v97_v10, 0.0 }
  0x71   :  { %240 = vadd.xlane.f32.xlu0 %v239_v19 }
  0x78   :  { %180 = vadd.xlane.f32.xlu1 %v179_v23  ;;  %201 = vadd.xlane.f32.xlu2 %v200_v24  ;;  %v91_v23 = vld [vmem:[#allocation3 + $0x178] sm:$0xff]  ;;  %v98_v24 = vld [vmem:[#allocation3 + $0x1b0] sm:$0xff] }
  0x79   :  { %282 = vadd.xlane.f32.xlu0 %v281_v25 }
  0x7b   :  { %v136_v29 = vpop.xlane.xlu1 %135  ;;  %v118_v30 = vpop.xlane.xlu2 %117 }
  0x7c   :  { %v112_v32 = vpop.xlane.xlu0 %111  ;;  %v397_v38 = vperm.slane %v136_v29, %v786_v35  ;;  %v374_v52 = vperm.slane %v118_v30, %v794_v39 }
  0x7d   :  { %v368_v48 = vperm.slane %v112_v32, %v786_v35 }
  0x80   :  { %243 = vadd.xlane.f32.xlu1 %v242_v33  ;;  %264 = vadd.xlane.f32.xlu2 %v263_v34  ;;  %v251_v33 = vsel %vm41_vm0, %v91_v23, 0.0  ;;  %v272_v34 = vsel %vm41_vm0, %v98_v24, 0.0 }
  0x81   :  { %222 = vadd.xlane.f32.xlu0 %v221_v36 }
  0x83   :  { %v139_v42 = vpop.xlane.xlu1 %138  ;;  %v142_v43 = vpop.xlane.xlu2 %141 }
  0x84   :  { %v398_v45 = vperm.slane %v139_v42, %v790_v37  ;;  %v400_v46 = vperm.slane %v142_v43, %v794_v39  ;;  %v115_v47 = vpop.xlane.xlu0 %114  ;;  %v99_v42 = vld [vmem:[#allocation3 + $0x1b8] sm:$0xff]  ;;  %v106_v43 = vld [vmem:[#allocation3 + $0x1f0] sm:$0xff] }
  0x85   :  { %v370_v49 = vperm.slane %v115_v47, %v790_v37 }
  0x86   :  { %v399_v53 = vsel %vm371_vm1, %v398_v45, %v397_v38 }
  0x87   :  { %v401_v55 = vsel %vm375_vm2, %v400_v46, %v399_v53  ;;  %v372_v56 = vsel %vm371_vm1, %v370_v49, %v368_v48  ;;  %v105_v46 = vld [vmem:[#allocation3 + $0x1e8] sm:$0xff] }
  0x88   :  { %204 = vadd.xlane.f32.xlu1 %v203_v50  ;;  %225 = vadd.xlane.f32.xlu2 %v224_v51  ;;  %v376_v58 = vsel %vm375_vm2, %v374_v52, %v372_v56  ;;  %v275_v50 = vsel %vm41_vm0, %v99_v42, 0.0  ;;  %v296_v51 = vsel %vm41_vm0, %v106_v43, 0.0  ;;  %v293_v53 = vsel %vm41_vm0, %v105_v46, 0.0 }
  0x89   :  { %285 = vadd.xlane.f32.xlu0 %v284_v54  ;;  %v886_v43 = vadd.s32 4294967240, %v786_v35 }
  0x8b   :  { %v163_v61 = vpop.xlane.xlu1 %162  ;;  %v121_v62 = vpop.xlane.xlu2 %120 }
  0x8c   :  { %v413_v0 = vperm.slane %v163_v61, %v790_v37  ;;  %v378_v1 = vperm.slane %v121_v62, %v808_v57  ;;  %v160_v2 = vpop.xlane.xlu0 %159 }
  0x8d   :  { %v412_v3 = vperm.slane %v160_v2, %v786_v35 }
  0x8e   :  { %v380_v6 = vsel %vm379_vm3, %v378_v1, %v376_v58 }
  0x8f   :  { %v414_v8 = vsel %vm371_vm1, %v413_v0, %v412_v3  ;;  %v299_v3 = vsel %vm41_vm0, %v107_v60, 0.0 }
  0x90   :  { %267 = vadd.xlane.f32.xlu1 %v266_v4  ;;  %288 = vadd.xlane.f32.xlu2 %v287_v5 }
  0x91   :  { %246 = vadd.xlane.f32.xlu0 %v245_v7 }
  0x93   :  { %v166_v11 = vpop.xlane.xlu1 %165  ;;  %v184_v12 = vpop.xlane.xlu2 %183 }
  0x94   :  { %v415_v14 = vperm.slane %v166_v11, %v794_v39  ;;  %v145_v15 = vpop.xlane.xlu0 %144  ;;  %v427_v25 = vperm.slane %v184_v12, %v786_v35 }
  0x95   :  { %v402_v16 = vperm.slane %v145_v15, %v808_v57 }
  0x96   :  { %v416_v19 = vsel %vm375_vm2, %v415_v14, %v414_v8  ;;  %v864_v14 = vadd.s32 4294967248, %v786_v35 }
  0x97   :  { %v403_v21 = vsel %vm379_vm3, %v402_v16, %v401_v55  ;;  %v847_v55 = vadd.s32 4294967256, %v786_v35 }
  0x98   :  { %249 = vadd.xlane.f32.xlu1 %v248_v17  ;;  %270 = vadd.xlane.f32.xlu2 %v269_v18 }
  0x99   :  { %228 = vadd.xlane.f32.xlu0 %v227_v20 }
  0x9b   :  { %v124_v26 = vpop.xlane.xlu1 %123  ;;  %v148_v27 = vpop.xlane.xlu2 %147 }
  0x9c   :  { %v382_v29 = vperm.slane %v124_v26, %v827_v22  ;;  %v404_v30 = vperm.slane %v148_v27, %v827_v22  ;;  %v187_v31 = vpop.xlane.xlu0 %186 }
  0x9d   :  { %v428_v32 = vperm.slane %v187_v31, %v790_v37 }
  0x9e   :  { %v384_v36 = vsel %vm383_vm4, %v382_v29, %v380_v6  ;;  %v405_v38 = vsel %vm383_vm4, %v404_v30, %v403_v21 }
  0x9f   :  { %v429_v41 = vsel %vm371_vm1, %v428_v32, %v427_v25 }
  0xa0   :  { %252 = vadd.xlane.f32.xlu1 %v251_v33  ;;  %273 = vadd.xlane.f32.xlu2 %v272_v34 }
  0xa1   :  { %291 = vadd.xlane.f32.xlu0 %v290_v40 }
  0xa3   :  { %v190_v44 = vpop.xlane.xlu1 %189  ;;  %v208_v45 = vpop.xlane.xlu2 %207 }
  0xa4   :  { %v430_v47 = vperm.slane %v190_v44, %v794_v39  ;;  %v169_v48 = vpop.xlane.xlu0 %168  ;;  %v442_v56 = vperm.slane %v208_v45, %v786_v35 }
  0xa5   :  { %v417_v49 = vperm.slane %v169_v48, %v808_v57 }
  0xa6   :  { %v431_v52 = vsel %vm375_vm2, %v430_v47, %v429_v41 }
  0xa7   :  { %v418_v54 = vsel %vm379_vm3, %v417_v49, %v416_v19 }
  0xa8   :  { %276 = vadd.xlane.f32.xlu1 %v275_v50  ;;  %297 = vadd.xlane.f32.xlu2 %v296_v51 }
  0xa9   :  { %294 = vadd.xlane.f32.xlu0 %v293_v53 }
  0xab   :  { %v127_v58 = vpop.xlane.xlu1 %126  ;;  %v151_v59 = vpop.xlane.xlu2 %150 }
  0xac   :  { %v386_v61 = vperm.slane %v127_v58, %v847_v55  ;;  %v406_v62 = vperm.slane %v151_v59, %v847_v55  ;;  %v211_v63 = vpop.xlane.xlu0 %210 }
  0xad   :  { %v443_v0 = vperm.slane %v211_v63, %v790_v37 }
  0xae   :  { %v388_v1 = vsel %vm387_vm5, %v386_v61, %v384_v36  ;;  %v407_v2 = vsel %vm387_vm5, %v406_v62, %v405_v38 }
  0xaf   :  { %v444_v4 = vsel %vm371_vm1, %v443_v0, %v442_v56 }
  0xb1   :  { %300 = vadd.xlane.f32.xlu0 %v299_v3 }
  0xb3   :  { %v193_v5 = vpop.xlane.xlu1 %192  ;;  %v214_v6 = vpop.xlane.xlu2 %213 }
  0xb4   :  { %v432_v7 = vperm.slane %v193_v5, %v808_v57  ;;  %v445_v8 = vperm.slane %v214_v6, %v794_v39  ;;  %v172_v9 = vpop.xlane.xlu0 %171 }
  0xb5   :  { %v419_v10 = vperm.slane %v172_v9, %v827_v22 }
  0xb6   :  { %v433_v11 = vsel %vm379_vm3, %v432_v7, %v431_v52  ;;  %v446_v12 = vsel %vm375_vm2, %v445_v8, %v444_v4 }
  0xb7   :  { %v420_v13 = vsel %vm383_vm4, %v419_v10, %v418_v54 }
  0xbb   :  { %v235_v15 = vpop.xlane.xlu1 %234  ;;  %v130_v16 = vpop.xlane.xlu2 %129 }
  0xbc   :  { %v458_v17 = vperm.slane %v235_v15, %v790_v37  ;;  %v390_v18 = vperm.slane %v130_v16, %v864_v14  ;;  %v232_v19 = vpop.xlane.xlu0 %231 }
  0xbd   :  { %v457_v20 = vperm.slane %v232_v19, %v786_v35 }
  0xbe   :  { %v392_v21 = vsel %vm391_vm6, %v390_v18, %v388_v1 }
  0xbf   :  { %v459_v23 = vsel %vm371_vm1, %v458_v17, %v457_v20 }
  0xc3   :  { %v175_v24 = vpop.xlane.xlu1 %174  ;;  %v196_v25 = vpop.xlane.xlu2 %195 }
  0xc4   :  { %v421_v26 = vperm.slane %v175_v24, %v847_v55  ;;  %v434_v27 = vperm.slane %v196_v25, %v827_v22  ;;  %v154_v28 = vpop.xlane.xlu0 %153 }
  0xc5   :  { %v408_v29 = vperm.slane %v154_v28, %v864_v14 }
  0xc6   :  { %v422_v30 = vsel %vm387_vm5, %v421_v26, %v420_v13  ;;  %v435_v31 = vsel %vm383_vm4, %v434_v27, %v433_v11  ;;  %v531_v26 = vld [vmem:[%s1023_s1 + $0x38] sm:$0xff]  ;;  %v530_v27 = vld [vmem:[%s1023_s1 + $0x30] sm:$0xff] }
  0xc7   :  { %v409_v32 = vsel %vm391_vm6, %v408_v29, %v407_v2  ;;  %547 = vmatpush.msra.mxu0 %v531_v26 }
  0xc9   :  { %548 = vmatpush.msra.mxu0 %v530_v27 }
  0xcb   :  { %v238_v33 = vpop.xlane.xlu1 %237  ;;  %v256_v34 = vpop.xlane.xlu2 %255 }
  0xcc   :  { %v460_v36 = vperm.slane %v238_v33, %v794_v39  ;;  %v217_v38 = vpop.xlane.xlu0 %216  ;;  %v472_v44 = vperm.slane %v256_v34, %v786_v35  ;;  %v528_v34 = vld [vmem:[%s1023_s1 + $0x20] sm:$0xff] }
  0xcd   :  { %v447_v40 = vperm.slane %v217_v38, %v808_v57 }
  0xce   :  { %v880_v41 = vsel %vm375_vm2, %v460_v36, %v459_v23  ;;  %v527_v36 = vld [vmem:[%s1023_s1 + $0x18] sm:$0xff] }
  0xcf   :  { %v883_v42 = vsel %vm379_vm3, %v447_v40, %v446_v12 }
  0xd3   :  { %v133_v45 = vpop.xlane.xlu1 %132  ;;  %v157_v46 = vpop.xlane.xlu2 %156 }
  0xd4   :  { %v394_v47 = vperm.slane %v133_v45, %v886_v43  ;;  %v410_v48 = vperm.slane %v157_v46, %v886_v43  ;;  %v259_v49 = vpop.xlane.xlu0 %258  ;;  %v526_v46 = vld [vmem:[%s1023_s1 + $0x10] sm:$0xff] }
  0xd5   :  { %v473_v50 = vperm.slane %v259_v49, %v790_v37 }
  0xd6   :  { %v396_v51 = vsel %vm395_vm7, %v394_v47, %v392_v21  ;;  %v411_v52 = vsel %vm395_vm7, %v410_v48, %v409_v32  ;;  %v704_v21 = vmov 0.0  }
  0xd7   :  { %v503_v53 = vsel %vm502_vm8, %v411_v52, %v396_v51  ;;  %v895_v54 = vsel %vm371_vm1, %v473_v50, %v472_v44  ;;  %42 = vst.msk [vmem:[#allocation2] sm:$0xff] %vm41_vm0, %v704_v21  ;;  %v525_v50 = vld [vmem:[%s1023_s1 + $0x8] sm:$0xff] }
  0xdb   :  { %v199_v56 = vpop.xlane.xlu1 %198  ;;  %v220_v58 = vpop.xlane.xlu2 %219 }
  0xdc   :  { %v178_v59 = vpop.xlane.xlu0 %177  ;;  %v436_v10 = vperm.slane %v199_v56, %v847_v55  ;;  %v449_v28 = vperm.slane %v220_v58, %v827_v22  ;;  %v524_v56 = vld [vmem:[%s1023_s1] sm:$0xff] }
  0xdd   :  { %v423_v60 = vperm.slane %v178_v59, %v864_v14 }
  0xde   :  { %v437_v15 = vsel %vm387_vm5, %v436_v10, %v435_v31  ;;  %v450_v38 = vsel %vm383_vm4, %v449_v28, %v883_v42 }
  0xdf   :  { %v424_v61 = vsel %vm391_vm6, %v423_v60, %v422_v30  ;;  %v529_v30 = vld [vmem:[%s1023_s1 + $0x28] sm:$0xff] }
  0xe0   :  { %549 = vmatpush.msra.mxu0 %v529_v30 }
  0xe2   :  { %550 = vmatpush.msra.mxu0 %v528_v34 }
  0xe3   :  { %v899_v62 = vpop.xlane.xlu1 %261  ;;  %v901_v63 = vpop.xlane.xlu2 %279 }
  0xe4   :  { %v241_v0 = vpop.xlane.xlu0 %240  ;;  %551 = vmatpush.msra.mxu0 %v527_v36 }
  0xe5   :  { %v462_v47 = vperm.slane %v241_v0, %v808_v57 }
  0xe6   :  { %552 = vmatpush.msra.mxu0 %v526_v46 }
  0xe7   :  { %v463_v58 = vsel %vm379_vm3, %v462_v47, %v880_v41  ;;  %v565_v41 = vld [vmem:[%s1025_s3 + $0x18] sm:$0xff] }
  0xe8   :  { %553 = vmatpush.msra.mxu0 %v525_v50  ;;  %586 = vmatpush.msra.mxu1 %v565_v41 }
  0xea   :  { %554 = vmatpush.msra.mxu0 %v524_v56 }
  0xeb   :  { %v181_v1 = vpop.xlane.xlu1 %180  ;;  %v202_v2 = vpop.xlane.xlu2 %201 }
  0xec   :  { %v425_v3 = vperm.slane %v181_v1, %v886_v43  ;;  %v904_v4 = vpop.xlane.xlu0 %282  ;;  %v438_v11 = vperm.slane %v202_v2, %v864_v14  ;;  %v475_v2 = vperm.slane %v899_v62, %v794_v39 }
  0xee   :  { %v426_v5 = vsel %vm395_vm7, %v425_v3, %v424_v61  ;;  %v439_v18 = vsel %vm391_vm6, %v438_v11, %v437_v15  ;;  %v476_v62 = vsel %vm375_vm2, %v475_v2, %v895_v54  ;;  %v487_v15 = vperm.slane %v901_v63, %v786_v35 }
  0xef   :  { %v505_v6 = vsel %vm504_vm9, %v426_v5, %v503_v53 }
  0xf3   :  { %v244_v7 = vpop.xlane.xlu1 %243  ;;  %v907_v8 = vpop.xlane.xlu2 %264 }
  0xf4   :  { %v223_v9 = vpop.xlane.xlu0 %222  ;;  %v464_v49 = vperm.slane %v244_v7, %v827_v22 }
  0xf5   :  { %v451_v29 = vperm.slane %v223_v9, %v847_v55 }
  0xf6   :  { %v465_v59 = vsel %vm383_vm4, %v464_v49, %v463_v58  ;;  %v644_v49 = vld [vmem:[%s1026_s4] ss:$0 sm:$0xff] }
  0xf7   :  { %v452_v44 = vsel %vm387_vm5, %v451_v29, %v450_v38 }
  0xfb   :  { %v205_v12 = vpop.xlane.xlu1 %204  ;;  %v226_v13 = vpop.xlane.xlu2 %225 }
  0xfc   :  { %v440_v16 = vperm.slane %v205_v12, %v886_v43  ;;  %v913_v17 = vpop.xlane.xlu0 %285  ;;  %v453_v31 = vperm.slane %v226_v13, %v864_v14 }
  0xfe   :  { %v441_v19 = vsel %vm395_vm7, %v440_v16, %v439_v18  ;;  %v454_v48 = vsel %vm391_vm6, %v453_v31, %v452_v44  ;;  %v643_v44 = vld [vmem:[%s1024_s2] ss:$0 sm:$0xff]  ;;  %s705_s2 = smov [#allocation6]  }
  0xff   :  { %v507_v20 = vsel %vm506_vm10, %v441_v19, %v505_v6  ;;  %v477_v6 = vperm.slane %v907_v8, %v808_v57  ;;  %v488_v8 = vperm.slane %v904_v4, %v790_v37  ;;  %v490_v19 = vperm.slane %v913_v17, %v794_v39 }
 0x101   :  { %v478_v13 = vsel %vm379_vm3, %v477_v6, %v476_v62  ;;  %v489_v4 = vsel %vm371_vm1, %v488_v8, %v487_v15  ;;  %vm594_vm1 = vcmp.lt.s32.totalorder %v786_v35, 10 }
 0x102   :  { %v491_v27 = vsel %vm375_vm2, %v490_v19, %v489_v4 }
 0x103   :  { %v268_v23 = vpop.xlane.xlu1 %267  ;;  %v918_v24 = vpop.xlane.xlu2 %288 }
 0x104   :  { %v247_v25 = vpop.xlane.xlu0 %246  ;;  %v479_v9 = vperm.slane %v268_v23, %v827_v22  ;;  %v492_v23 = vperm.slane %v918_v24, %v808_v57 }
 0x105   :  { %v466_v51 = vperm.slane %v247_v25, %v847_v55 }
 0x106   :  { %v480_v16 = vsel %vm383_vm4, %v479_v9, %v478_v13  ;;  %v493_v28 = vsel %vm379_vm3, %v492_v23, %v491_v27 }
 0x107   :  { %v467_v61 = vsel %vm387_vm5, %v466_v51, %v465_v59 }
 0x10b   :  { %v250_v32 = vpop.xlane.xlu1 %249  ;;  %v271_v33 = vpop.xlane.xlu2 %270 }
 0x10c   :  { %v229_v40 = vpop.xlane.xlu0 %228  ;;  %v468_v53 = vperm.slane %v250_v32, %v864_v14  ;;  %v481_v11 = vperm.slane %v271_v33, %v847_v55  ;;  %v108_v32 = vld [vmem:[#allocation2] sm:$0xff] }
 0x10d   :  { %v455_v45 = vperm.slane %v229_v40, %v886_v43  ;;  %v562_v40 = vld [vmem:[%s1025_s3] sm:$0xff] }
 0x10e   :  { %v469_v3 = vsel %vm391_vm6, %v468_v53, %v467_v61 }
 0x10f   :  { %v456_v42 = vsel %vm395_vm7, %v455_v45, %v454_v48 }
 0x110   :  { %v509_v52 = vsel %vm508_vm11, %v456_v42, %v507_v20  ;;  %v482_v20 = vsel %vm387_vm5, %v481_v11, %v480_v16 }
 0x113   :  { %v253_v60 = vpop.xlane.xlu1 %252  ;;  %v274_v5 = vpop.xlane.xlu2 %273 }
 0x114   :  { %v470_v0 = vperm.slane %v253_v60, %v886_v43  ;;  %v292_v1 = vpop.xlane.xlu0 %291  ;;  %v483_v12 = vperm.slane %v274_v5, %v864_v14 }
 0x115   :  { %v494_v25 = vperm.slane %v292_v1, %v827_v22 }
 0x116   :  { %v471_v7 = vsel %vm395_vm7, %v470_v0, %v469_v3  ;;  %v484_v63 = vsel %vm391_vm6, %v483_v12, %v482_v20 }
 0x117   :  { %v511_v10 = vsel %vm510_vm12, %v471_v7, %v509_v52  ;;  %v495_v29 = vsel %vm383_vm4, %v494_v25, %v493_v28 }
 0x11b   :  { %v277_v18 = vpop.xlane.xlu1 %276  ;;  %v298_v17 = vpop.xlane.xlu2 %297 }
 0x11c   :  { %v485_v54 = vperm.slane %v277_v18, %v886_v43  ;;  %v295_v21 = vpop.xlane.xlu0 %294  ;;  %v498_v57 = vperm.slane %v298_v17, %v864_v14  ;;  %v564_v14 = vld [vmem:[%s1025_s3 + $0x10] sm:$0xff] }
 0x11d   :  { %v496_v39 = vperm.slane %v295_v21, %v847_v55  ;;  %587 = vmatpush.msra.mxu1 %v564_v14 }
 0x11e   :  { %v486_v37 = vsel %vm395_vm7, %v485_v54, %v484_v63 }
 0x11f   :  { %v513_v26 = vsel %vm512_vm13, %v486_v37, %v511_v10  ;;  %v497_v24 = vsel %vm387_vm5, %v496_v39, %v495_v29 }
 0x120   :  { %v499_v31 = vsel %vm391_vm6, %v498_v57, %v497_v24 }
 0x124   :  { %v301_v30 = vpop.xlane.xlu0 %300 }
 0x125   :  { %v500_v22 = vperm.slane %v301_v30, %v886_v43  ;;  %v563_v43 = vld [vmem:[%s1025_s3 + $0x8] sm:$0xff]  ;;  %s624_s3 = sshll.u32 %s705_s2, 4  ;;  %s625_s3 = int_to_ptr.vmem [resolvable:$true] %s624_s3 }
 0x126   :  { %588 = vmatpush.msra.mxu1 %v563_v43 }
 0x127   :  { %v501_v55 = vsel %vm395_vm7, %v500_v22, %v499_v31 }
 0x128   :  { %v515_v33 = vsel %vm514_vm14, %v501_v55, %v513_v26  ;;  %589 = vmatpush.msra.mxu1 %v562_v40 }
 0x129   :  { %v517_v34 = vadd.f32 %v515_v33, %v108_v32 }
 0x12b   :  { %518 = vst.msk [vmem:[#allocation2] sm:$0xff] %vm41_vm0, %v517_v34 }
 0x132   :  { %v522_v36 = vld [vmem:[#allocation2] sm:$0xff] }
 0x133   :  { %v523_v38 = vmul.f32 0.015625, %v522_v36 }
 0x135   :  { %636 = vmatmul.msk.f32.vlgmr.msra.gmra.mxu0 %vm41_vm0, %v523_v38  ;;  %vm570_vm0 = vcmask 261120  }
 0x1b2   :  { %v556_v45 = vpop.f32.mrf.mxu0 }
 0x1b3   :  { %v557_v46 = vadd.f32 %v643_v44, %v556_v45 }
 0x1b5   :  { %v560_v47 = vmul.f32 0.01, %v557_v46  ;;  %vm559_vm15 = vcmp.gt.f32.partialorder %v557_v46, 0.0 }
 0x1b7   :  { %v561_v48 = vsel %vm559_vm15, %v557_v46, %v560_v47 }
 0x1b8   :  { %637 = vmatmul.msk.f32.vlgmr.msra.gmra.mxu1 %vm570_vm0, %v561_v48 }
 0x235   :  { %v591_v42 = vpop.f32.mrf.mxu1 }
 0x236   :  { %v592_v50 = vadd.f32 %v644_v49, %v591_v42 }
 0x238   :  { %v595_v51 = vsel %vm594_vm1, %v592_v50, -1e+30 }
 0x239   :  { %596 = vmax.xlane.f32.xlu1 %v595_v51 }
 0x2ac   :  { %v597_v52 = vpop.xlane.xlu1 %596 }
 0x2ad   :  { %v598_v53 = vsub.f32 %v595_v51, %v597_v52 }
 0x2af   :  { %v599_v56 = vmul.f32 1.442695, %v598_v53 }
 0x2b1   :  { %645 = vpow2.f32 %v599_v56 }
 0x2b7   :  { %v646_v58 = vpop.eup %645 }
 0x2b8   :  { %601 = vadd.xlane.f32.xlu2 %v646_v58 }
 0x32b   :  { %v602_v59 = vpop.xlane.xlu2 %601 }
 0x32c   :  { %647 = vrcp.f32 %v602_v59  ;;  %v614_v1 = vand.u32 2147483648, %v602_v59  ;;  %v612_v3 = vand.u32 2147483647, %v602_v59  ;;  %vm608_vm3 = vweird.f32 %v602_v59 }
 0x32e   :  { %v615_v35 = vor.u32 1.1754944e-38, %v614_v1  ;;  %vm613_vm5 = vcmp.eq.f32.partialorder %v612_v3, 8.507059e+37 }
 0x332   :  { %v648_v60 = vpop.eup %647 }
 0x333   :  { %v604_v61 = vmul.f32 %v648_v60, %v602_v59  ;;  %vm609_vm2 = vweird.f32 %v648_v60 }
 0x334   :  { %vm610_vm4 = vmor %vm608_vm3, %vm609_vm2 }
 0x335   :  { %v605_v0 = vsub.f32 1.0, %v604_v61 }
 0x337   :  { %v606_v2 = vmul.f32 %v648_v60, %v605_v0 }
 0x339   :  { %v607_v5 = vadd.f32 %v648_v60, %v606_v2 }
 0x33b   :  { %v611_v41 = vsel %vm610_vm4, %v648_v60, %v607_v5 }
 0x33c   :  { %v616_v6 = vsel %vm613_vm5, %v615_v35, %v611_v41 }
 0x33d   :  { %v617_v7 = vmul.f32 %v646_v58, %v616_v6 }
 0x33f   :  { %618 = vst [vmem:[#allocation6] sm:$0xff] %v617_v7 }
 0x340   :  { %629 = dma.vmem_to_hbm [thread:$0]  %s625_s3, 128, %s627_s26, [#allocation5]  }
 0x341   :  { %699 = dma.done.wait [#allocation5], 128  }
 0x342   :  { %700 = vsyncadd [#allocation5], 4294967168 }
 0x343   :  { %634 = vsyncpa [#allocation4], 1 }
 0x344   :  { %635 = vsyncpa [#allocation5], 1 }

</bundles_post_ra>
